<compile_context>
chip_gen: v6e
topology: v6e:2x2x1
jax: 0.10.0
libtpu: 0.0.40
codegen_flags: <defaults>
</compile_context>

<pallas_src>
import functools

import jax
import jax.numpy as jnp
from jax.experimental import pallas as pl
from jax.experimental.pallas import tpu as pltpu

EPS = 1e-5
_LANE = 128


def _pad_to(v, m):
    return ((v + m - 1) // m) * m


def _vmem_limit_bytes(required):
    """Generation-aware VMEM budget: fits v7x (64 MiB) and v5e/v6e (128 MiB)."""
    try:
        cap = pltpu.get_tpu_info().vmem_capacity_bytes
    except Exception:  # pragma: no cover - conservative fallback (v7x per-TC)
        cap = 64 << 20
    limit = max(2 * int(required) + (4 << 20), 32 << 20)
    return int(min(limit, cap - (8 << 20)))


def _make_fused_kernel(d0, gen_dims, d_total):
    """Build the fused generator kernel for a fixed set of layer widths."""
    num_res = len(gen_dims)

    def kernel(*refs):
        x_ref = refs[0]                                  # [N, D0]       f32
        layer_refs = refs[1:1 + 2 * num_res]             # (w_t, bgb) per layer
        wf_ref = refs[1 + 2 * num_res]                   # [D_total, Dp] bf16
        bf_ref = refs[2 + 2 * num_res]                   # [1, Dp]       f32
        out_ref = refs[3 + 2 * num_res]                  # [N, Dp]       f32
        h_ref = refs[4 + 2 * num_res]                    # [N, D_total]  bf16 scratch

        # PyTorch's concat([out, input], 1) keeps `input` as the trailing
        # columns of every layer, so the buffer layout is
        # [out_K | ... | out_1 | x]; seed the tail with the bf16 input.
        start = d_total - d0
        h_ref[:, start:] = x_ref[...].astype(jnp.bfloat16)

        for k in range(num_res):
            w_ref = layer_refs[2 * k]                    # [I_k, O_k] bf16
            p_ref = layer_refs[2 * k + 1]                # [3, O_k]   f32 (b, gamma, beta)
            o_k = gen_dims[k]
            in_start = start

            # Linear on the MXU (bf16 operands, f32 accumulation).
            h = jnp.dot(h_ref[:, in_start:], w_ref[...],
                        preferred_element_type=jnp.float32)
            h = h + p_ref[0:1, :]

            # BatchNorm1d (training mode): biased batch statistics in f32.
            # (Column sums stay on the VPU: N is small; the MXU variant only
            # pays off for N in the hundreds.)
            mean = jnp.mean(h, axis=0, keepdims=True)
            centered = h - mean
            var = jnp.mean(centered * centered, axis=0, keepdims=True)
            scale = jax.lax.rsqrt(var + EPS) * p_ref[1:2, :]   # folded affine
            y = jnp.maximum(centered * scale + p_ref[2:3, :], 0.0)

            # In-kernel concat: new activation slab is prepended to the buffer.
            start = in_start - o_k
            h_ref[:, start:in_start] = y.astype(jnp.bfloat16)

        # Final Linear over the full concatenated activation.
        out_ref[...] = (
            jnp.dot(h_ref[...], wf_ref[...], preferred_element_type=jnp.float32)
            + bf_ref[...]
        )

    return kernel


def generator_forward(params, x, *, data_dim):
    n, d0 = x.shape
    residuals = params["residuals"]
    gen_dims = tuple(int(r["w_t"].shape[1]) for r in residuals)
    d_total = int(params["final"]["w_t"].shape[0])
    data_dim_p = int(params["final"]["w_t"].shape[1])
    assert d_total == d0 + sum(gen_dims)

    kernel = _make_fused_kernel(d0, gen_dims, d_total)

    flat_inputs = [x]
    for r in residuals:
        flat_inputs += [r["w_t"], r["bgb"]]
    flat_inputs += [params["final"]["w_t"], params["final"]["b"]]

    # Rough VMEM working-set estimate (inputs + bf16 scratch + f32 epilogue).
    required = n * d0 * 4 + n * d_total * 2
    for r in residuals:
        required += int(r["w_t"].size) * 2 + int(r["bgb"].size) * 4
        required += n * int(r["w_t"].shape[1]) * 4
    required += int(params["final"]["w_t"].size) * 2 + data_dim_p * 4
    required += 2 * n * data_dim_p * 4

    vmem_spec = pl.BlockSpec(memory_space=pltpu.MemorySpace.VMEM)
    out = pl.pallas_call(
        kernel,
        out_shape=jax.ShapeDtypeStruct((n, data_dim_p), jnp.float32),
        in_specs=[vmem_spec] * len(flat_inputs),
        out_specs=vmem_spec,
        scratch_shapes=[pltpu.VMEM((n, d_total), jnp.bfloat16)],
        compiler_params=pltpu.CompilerParams(
            vmem_limit_bytes=_vmem_limit_bytes(required)),
    )(*flat_inputs)

    return out[:, :data_dim] if data_dim_p != data_dim else out


def make_params(residual_raw, final_raw):
    """Pre-transpose fc weights to [I, O] bf16 once; pack (b, gamma, beta);
    pad the final Linear's output dim to a multiple of 128 lanes."""
    residuals = []
    for w, b, gamma, beta in residual_raw:
        residuals.append(dict(
            w_t=jnp.asarray(w, jnp.float32).T.astype(jnp.bfloat16),
            bgb=jnp.stack([jnp.asarray(b, jnp.float32),
                           jnp.asarray(gamma, jnp.float32),
                           jnp.asarray(beta, jnp.float32)], axis=0),
        ))
    w_fin, b_fin = final_raw
    data_dim, d_total = w_fin.shape
    data_dim_p = _pad_to(data_dim, _LANE)
    w_t = jnp.zeros((d_total, data_dim_p), jnp.bfloat16)
    w_t = w_t.at[:, :data_dim].set(
        jnp.asarray(w_fin, jnp.float32).T.astype(jnp.bfloat16))
    b_p = jnp.zeros((1, data_dim_p), jnp.float32)
    b_p = b_p.at[0, :data_dim].set(jnp.asarray(b_fin, jnp.float32))
    params = dict(residuals=residuals, final=dict(w_t=w_t, b=b_p))
    return params, int(data_dim)


def reference_forward(residual_raw, final_raw, x):
    """Pure-JAX reference mimicking the kernel's bf16 matmul-input rounding."""
    def r16(v):
        return v.astype(jnp.bfloat16).astype(jnp.float32)

    h = x
    for w, b, gamma, beta in residual_raw:
        z = jnp.dot(r16(h), r16(w).T, precision=jax.lax.Precision.HIGHEST) + b
        mu = jnp.mean(z, axis=0, keepdims=True)
        var = jnp.mean((z - mu) ** 2, axis=0, keepdims=True)
        zn = (z - mu) * jax.lax.rsqrt(var + EPS) * gamma + beta
        h = jnp.concatenate([jnp.maximum(zn, 0.0), h], axis=1)
    w_fin, b_fin = final_raw
    return jnp.dot(r16(h), r16(w_fin).T, precision=jax.lax.Precision.HIGHEST) + b_fin


if __name__ == "__main__":
    # Small but TPU-friendly shapes: batch is a multiple of 16 (bf16 sublane
    # packing) and feature widths are multiples of 128 (lane-dense slabs).
    # Realistic CTGAN batches (N~500) should be stacked along N for MXU fill.
    N = 32
    embedding_dim = 128
    gen_dims = (384, 128)
    data_dim = 128

    key = jax.random.PRNGKey(0)
    key, kx = jax.random.split(key)
    x = jax.random.normal(kx, (N, embedding_dim), dtype=jnp.float32)

    residual_raw = []
    dim = embedding_dim
    for o in gen_dims:
        key, kw, kb, kg, kbe = jax.random.split(key, 5)
        w = jax.random.normal(kw, (o, dim), jnp.float32) * (dim ** -0.5)   # fc.weight [O, I]
        b = 0.1 * jax.random.normal(kb, (o,), jnp.float32)                 # fc.bias
        gamma = 1.0 + 0.1 * jax.random.normal(kg, (o,), jnp.float32)       # bn.weight
        beta = 0.1 * jax.random.normal(kbe, (o,), jnp.float32)             # bn.bias
        residual_raw.append((w, b, gamma, beta))
        dim += o
    key, kw, kb = jax.random.split(key, 3)
    w_fin = jax.random.normal(kw, (data_dim, dim), jnp.float32) * (dim ** -0.5)
    b_fin = 0.1 * jax.random.normal(kb, (data_dim,), jnp.float32)

    params, dd = make_params(residual_raw, (w_fin, b_fin))

    fwd = jax.jit(functools.partial(generator_forward, data_dim=dd))
    out = jax.block_until_ready(fwd(params, x))

    ref = reference_forward(residual_raw, (w_fin, b_fin), x)
    assert out.shape == (N, data_dim)
    max_err = float(jnp.max(jnp.abs(out - ref)))
    assert max_err < 2e-2, f"max abs err {max_err}"
    print("KERNEL_OK")
</pallas_src>

<mosaic_0001>
module attributes {stable_mosaic.version = 11 : i64} {
  func.func @kernel(%arg0: memref<32x128xf32, #tpu.memory_space<vmem>>, %arg1: memref<128x384xbf16, #tpu.memory_space<vmem>>, %arg2: memref<3x384xf32, #tpu.memory_space<vmem>>, %arg3: memref<512x128xbf16, #tpu.memory_space<vmem>>, %arg4: memref<3x128xf32, #tpu.memory_space<vmem>>, %arg5: memref<640x128xbf16, #tpu.memory_space<vmem>>, %arg6: memref<1x128xf32, #tpu.memory_space<vmem>>, %arg7: memref<32x128xf32, #tpu.memory_space<vmem>>, %arg8: memref<32x640xbf16, #tpu.memory_space<vmem>>) attributes {dimension_semantics = [], scalar_prefetch = 0 : i64, scratch_operands = 1 : i64, tpu.core_type = #tpu.core_type<tc>} {
    %c0 = arith.constant 0 : index
    %c0_0 = arith.constant 0 : index
    %0 = vector.load %arg0[%c0, %c0_0] : memref<32x128xf32, #tpu.memory_space<vmem>>, vector<32x128xf32>
    %1 = arith.truncf %0 : vector<32x128xf32> to vector<32x128xbf16>
    %c0_1 = arith.constant 0 : index
    %c512 = arith.constant 512 : index
    %2 = vector.load %arg8[%c0_1, %c512] : memref<32x640xbf16, #tpu.memory_space<vmem>>, vector<32x128xbf16>
    tpu.vector_store %arg8[%c0_1, %c512], %1 {strides = array<i32>} : memref<32x640xbf16, #tpu.memory_space<vmem>>, vector<32x128xbf16>,
    %c0_2 = arith.constant 0 : index
    %c512_3 = arith.constant 512 : index
    %3 = vector.load %arg8[%c0_2, %c512_3] : memref<32x640xbf16, #tpu.memory_space<vmem>>, vector<32x128xbf16>
    %c0_4 = arith.constant 0 : index
    %c0_5 = arith.constant 0 : index
    %4 = vector.load %arg1[%c0_4, %c0_5] : memref<128x384xbf16, #tpu.memory_space<vmem>>, vector<128x384xbf16>
    %cst = arith.constant dense<0.000000e+00> : vector<32x384xf32>
    %5 = tpu.matmul %3, %4, %cst {dimension_numbers = #tpu.dot_dimension_numbers<[1], [0], [0], [1], [0, 0, 1, 1], [], []>} : vector<32x128xbf16>, vector<128x384xbf16>, vector<32x384xf32> -> vector<32x384xf32>
    %c0_6 = arith.constant 0 : index
    %c0_7 = arith.constant 0 : index
    %6 = vector.load %arg2[%c0_6, %c0_7] : memref<3x384xf32, #tpu.memory_space<vmem>>, vector<1x384xf32>
    %7 = vector.broadcast %6 : vector<1x384xf32> to vector<32x384xf32>
    %8 = arith.addf %5, %7 : vector<32x384xf32>
    %cst_8 = arith.constant dense<0.000000e+00> : vector<384xf32>
    %9 = vector.multi_reduction <add>, %8, %cst_8 [0] : vector<32x384xf32> to vector<384xf32>
    %10 = vector.shape_cast %9 : vector<384xf32> to vector<1x384xf32>
    %cst_9 = arith.constant 3.200000e+01 : f32
    %11 = vector.broadcast %cst_9 : f32 to vector<1x384xf32>
    %12 = arith.divf %10, %11 : vector<1x384xf32>
    %13 = vector.broadcast %12 : vector<1x384xf32> to vector<32x384xf32>
    %14 = arith.subf %8, %13 : vector<32x384xf32>
    %15 = arith.mulf %14, %14 : vector<32x384xf32>
    %cst_10 = arith.constant dense<0.000000e+00> : vector<384xf32>
    %16 = vector.multi_reduction <add>, %15, %cst_10 [0] : vector<32x384xf32> to vector<384xf32>
    %17 = vector.shape_cast %16 : vector<384xf32> to vector<1x384xf32>
    %cst_11 = arith.constant 3.200000e+01 : f32
    %18 = vector.broadcast %cst_11 : f32 to vector<1x384xf32>
    %19 = arith.divf %17, %18 : vector<1x384xf32>
    %cst_12 = arith.constant 9.99999974E-6 : f32
    %20 = vector.broadcast %cst_12 : f32 to vector<1x384xf32>
    %21 = arith.addf %19, %20 : vector<1x384xf32>
    %22 = math.rsqrt %21 : vector<1x384xf32>
    %c1 = arith.constant 1 : index
    %c0_13 = arith.constant 0 : index
    %23 = vector.load %arg2[%c1, %c0_13] : memref<3x384xf32, #tpu.memory_space<vmem>>, vector<1x384xf32>
    %24 = arith.mulf %22, %23 : vector<1x384xf32>
    %25 = vector.broadcast %24 : vector<1x384xf32> to vector<32x384xf32>
    %26 = arith.mulf %14, %25 : vector<32x384xf32>
    %c2 = arith.constant 2 : index
    %c0_14 = arith.constant 0 : index
    %27 = vector.load %arg2[%c2, %c0_14] : memref<3x384xf32, #tpu.memory_space<vmem>>, vector<1x384xf32>
    %28 = vector.broadcast %27 : vector<1x384xf32> to vector<32x384xf32>
    %29 = arith.addf %26, %28 : vector<32x384xf32>
    %cst_15 = arith.constant 0.000000e+00 : f32
    %30 = vector.broadcast %cst_15 : f32 to vector<32x384xf32>
    %31 = arith.maximumf %29, %30 : vector<32x384xf32>
    %32 = arith.truncf %31 : vector<32x384xf32> to vector<32x384xbf16>
    %c0_16 = arith.constant 0 : index
    %c128 = arith.constant 128 : index
    %33 = vector.load %arg8[%c0_16, %c128] : memref<32x640xbf16, #tpu.memory_space<vmem>>, vector<32x384xbf16>
    tpu.vector_store %arg8[%c0_16, %c128], %32 {strides = array<i32>} : memref<32x640xbf16, #tpu.memory_space<vmem>>, vector<32x384xbf16>,
    %c0_17 = arith.constant 0 : index
    %c128_18 = arith.constant 128 : index
    %34 = vector.load %arg8[%c0_17, %c128_18] : memref<32x640xbf16, #tpu.memory_space<vmem>>, vector<32x512xbf16>
    %c0_19 = arith.constant 0 : index
    %c0_20 = arith.constant 0 : index
    %35 = vector.load %arg3[%c0_19, %c0_20] : memref<512x128xbf16, #tpu.memory_space<vmem>>, vector<512x128xbf16>
    %cst_21 = arith.constant dense<0.000000e+00> : vector<32x128xf32>
    %36 = tpu.matmul %34, %35, %cst_21 {dimension_numbers = #tpu.dot_dimension_numbers<[1], [0], [0], [1], [0, 0, 1, 1], [], []>} : vector<32x512xbf16>, vector<512x128xbf16>, vector<32x128xf32> -> vector<32x128xf32>
    %c0_22 = arith.constant 0 : index
    %c0_23 = arith.constant 0 : index
    %37 = vector.load %arg4[%c0_22, %c0_23] : memref<3x128xf32, #tpu.memory_space<vmem>>, vector<1x128xf32>
    %38 = vector.broadcast %37 : vector<1x128xf32> to vector<32x128xf32>
    %39 = arith.addf %36, %38 : vector<32x128xf32>
    %cst_24 = arith.constant dense<0.000000e+00> : vector<128xf32>
    %40 = vector.multi_reduction <add>, %39, %cst_24 [0] : vector<32x128xf32> to vector<128xf32>
    %41 = vector.shape_cast %40 : vector<128xf32> to vector<1x128xf32>
    %cst_25 = arith.constant 3.200000e+01 : f32
    %42 = vector.broadcast %cst_25 : f32 to vector<1x128xf32>
    %43 = arith.divf %41, %42 : vector<1x128xf32>
    %44 = vector.broadcast %43 : vector<1x128xf32> to vector<32x128xf32>
    %45 = arith.subf %39, %44 : vector<32x128xf32>
    %46 = arith.mulf %45, %45 : vector<32x128xf32>
    %cst_26 = arith.constant dense<0.000000e+00> : vector<128xf32>
    %47 = vector.multi_reduction <add>, %46, %cst_26 [0] : vector<32x128xf32> to vector<128xf32>
    %48 = vector.shape_cast %47 : vector<128xf32> to vector<1x128xf32>
    %cst_27 = arith.constant 3.200000e+01 : f32
    %49 = vector.broadcast %cst_27 : f32 to vector<1x128xf32>
    %50 = arith.divf %48, %49 : vector<1x128xf32>
    %cst_28 = arith.constant 9.99999974E-6 : f32
    %51 = vector.broadcast %cst_28 : f32 to vector<1x128xf32>
    %52 = arith.addf %50, %51 : vector<1x128xf32>
    %53 = math.rsqrt %52 : vector<1x128xf32>
    %c1_29 = arith.constant 1 : index
    %c0_30 = arith.constant 0 : index
    %54 = vector.load %arg4[%c1_29, %c0_30] : memref<3x128xf32, #tpu.memory_space<vmem>>, vector<1x128xf32>
    %55 = arith.mulf %53, %54 : vector<1x128xf32>
    %56 = vector.broadcast %55 : vector<1x128xf32> to vector<32x128xf32>
    %57 = arith.mulf %45, %56 : vector<32x128xf32>
    %c2_31 = arith.constant 2 : index
    %c0_32 = arith.constant 0 : index
    %58 = vector.load %arg4[%c2_31, %c0_32] : memref<3x128xf32, #tpu.memory_space<vmem>>, vector<1x128xf32>
    %59 = vector.broadcast %58 : vector<1x128xf32> to vector<32x128xf32>
    %60 = arith.addf %57, %59 : vector<32x128xf32>
    %cst_33 = arith.constant 0.000000e+00 : f32
    %61 = vector.broadcast %cst_33 : f32 to vector<32x128xf32>
    %62 = arith.maximumf %60, %61 : vector<32x128xf32>
    %63 = arith.truncf %62 : vector<32x128xf32> to vector<32x128xbf16>
    %c0_34 = arith.constant 0 : index
    %c0_35 = arith.constant 0 : index
    %64 = vector.load %arg8[%c0_34, %c0_35] : memref<32x640xbf16, #tpu.memory_space<vmem>>, vector<32x128xbf16>
    tpu.vector_store %arg8[%c0_34, %c0_35], %63 {strides = array<i32>} : memref<32x640xbf16, #tpu.memory_space<vmem>>, vector<32x128xbf16>,
    %c0_36 = arith.constant 0 : index
    %c0_37 = arith.constant 0 : index
    %65 = vector.load %arg8[%c0_36, %c0_37] : memref<32x640xbf16, #tpu.memory_space<vmem>>, vector<32x640xbf16>
    %c0_38 = arith.constant 0 : index
    %c0_39 = arith.constant 0 : index
    %66 = vector.load %arg5[%c0_38, %c0_39] : memref<640x128xbf16, #tpu.memory_space<vmem>>, vector<640x128xbf16>
    %cst_40 = arith.constant dense<0.000000e+00> : vector<32x128xf32>
    %67 = tpu.matmul %65, %66, %cst_40 {dimension_numbers = #tpu.dot_dimension_numbers<[1], [0], [0], [1], [0, 0, 1, 1], [], []>} : vector<32x640xbf16>, vector<640x128xbf16>, vector<32x128xf32> -> vector<32x128xf32>
    %c0_41 = arith.constant 0 : index
    %c0_42 = arith.constant 0 : index
    %68 = vector.load %arg6[%c0_41, %c0_42] : memref<1x128xf32, #tpu.memory_space<vmem>>, vector<1x128xf32>
    %69 = vector.broadcast %68 : vector<1x128xf32> to vector<32x128xf32>
    %70 = arith.addf %67, %69 : vector<32x128xf32>
    %c0_43 = arith.constant 0 : index
    %c0_44 = arith.constant 0 : index
    %71 = vector.load %arg7[%c0_43, %c0_44] : memref<32x128xf32, #tpu.memory_space<vmem>>, vector<32x128xf32>
    tpu.vector_store %arg7[%c0_43, %c0_44], %70 {strides = array<i32>} : memref<32x128xf32, #tpu.memory_space<vmem>>, vector<32x128xf32>,
    return
  }
}

</mosaic_0001>

<bundles_post_ra>
// kernel: generator_forward.1
= control target key start
LH: loop header
LB: loop body
LE: loop exit
PB: predicated region body
PF: predicated region fallthrough
CT: control target
= control target key end

     0   :  { %12 = vsyncpa [#allocation4], 0  ;;  %s2499_s0 = inlined_call_operand.hbm [shape: f32[32,128], index: 0, kind: input, shape index: {}]   ;;  %s2500_s1 = inlined_call_operand.hbm [shape: bf16[128,384], index: 1, kind: input, shape index: {}]   ;;  %s2501_s2 = inlined_call_operand.hbm [shape: f32[3,384], index: 2, kind: input, shape index: {}]   ;;  %s2502_s3 = inlined_call_operand.hbm [shape: bf16[512,128], index: 3, kind: input, shape index: {}]   ;;  %s2503_s4 = inlined_call_operand.vmem [shape: f32[3,128], index: 4, kind: input, shape index: {}]   ;;  %s2504_s5 = inlined_call_operand.hbm [shape: bf16[640,128], index: 5, kind: input, shape index: {}]   ;;  %s2505_s6 = inlined_call_operand.hbm [shape: f32[1,128], index: 6, kind: input, shape index: {}]   ;;  %s2506_s7 = inlined_call_operand.hbm [shape: f32[32,128], index: 7, kind: output, shape index: {}]  }
   0x1   :  { %13 = vsyncpa [#allocation7], 0 }
   0x2   :  { %14 = vsyncpa [#allocation10], 0 }
   0x3   :  { %15 = vsyncpa [#allocation13], 0 }
   0x4   :  { %16 = vsyncpa [#allocation5], 0  ;;  %s2318_s24 = smov [#allocation6]  }
   0x5   :  { %s34_s25 = sshll.u32 %s2318_s24, 4  ;;  %s35_s25 = int_to_ptr.vmem [resolvable:$true] %s34_s25 }
   0x6   :  { %s2176_s26 = scalar_lea.vmem %s35_s25, 3072  ;;  %p2181_p1 = scmp.lt.s32.totalorder %s35_s25, %s35_s25 }
   0x7   :  { %p2177_p0 = scmp.ne.s32.totalorder %s35_s25, %s2176_s26  ;;  %p2182_p2 = scmp.lt.s32.totalorder %s2176_s26, %s2176_s26 }
   0x9   :  { %p2183_p3 = por %p2182_p2, %p2181_p1 }
   0xb   :  { %p2184_p4 = pnand %p2183_p3, %p2177_p0 }
   0xd   :  { %2187 = shalt.err (!%p2184_p4)
}
   0xe   :  { %s2319_s27 = smov 192   ;;  %s2320_s28 = smov 12  }
   0xf   :  { %40 = dma.hbm_to_vmem [thread:$0]  %s2500_s1, 3072, %s35_s25, [#allocation7], %s2319_s27, %s2319_s27, %s2320_s28  }
  0x10   :  { %s2321_s8 = smov [#allocation9]  }
  0x11   :  { %s56_s9 = sshll.u32 %s2321_s8, 4  ;;  %s57_s9 = int_to_ptr.vmem [resolvable:$true] %s56_s9 }
  0x12   :  { %s2196_s10 = scalar_lea.vmem %s57_s9, 4096  ;;  %p2201_p6 = scmp.lt.s32.totalorder %s57_s9, %s57_s9 }
  0x13   :  { %p2197_p5 = scmp.ne.s32.totalorder %s57_s9, %s2196_s10  ;;  %p2202_p7 = scmp.lt.s32.totalorder %s2196_s10, %s2196_s10 }
  0x15   :  { %p2203_p8 = por %p2202_p7, %p2201_p6 }
  0x17   :  { %p2204_p9 = pnand %p2203_p8, %p2197_p5 }
  0x19   :  { %2207 = shalt.err (!%p2204_p9)
}
  0x1a   :  { %s2322_s11 = smov 64   ;;  %s2323_s12 = smov 4  }
  0x1b   :  { %62 = dma.hbm_to_vmem [thread:$0]  %s2502_s3, 4096, %s57_s9, [#allocation10], %s2322_s11, %s2322_s11, %s2323_s12  }
  0x1c   :  { %s2324_s1 = smov [#allocation3]  }
  0x1d   :  { %s22_s15 = sshll.u32 %s2324_s1, 4  ;;  %s23_s15 = int_to_ptr.vmem [resolvable:$true] %s22_s15 }
  0x1e   :  { %s2216_s16 = scalar_lea.vmem %s23_s15, 512  ;;  %p2221_p11 = scmp.lt.s32.totalorder %s23_s15, %s23_s15 }
  0x1f   :  { %p2217_p10 = scmp.ne.s32.totalorder %s23_s15, %s2216_s16  ;;  %p2222_p12 = scmp.lt.s32.totalorder %s2216_s16, %s2216_s16 }
  0x21   :  { %p2223_p13 = por %p2222_p12, %p2221_p11 }
  0x23   :  { %p2224_p0 = pnand %p2223_p13, %p2217_p10 }
  0x25   :  { %2227 = shalt.err (!%p2224_p0)
}
  0x26   :  { %s2325_s17 = smov 128   ;;  %s2326_s18 = smov 8  }
  0x27   :  { %28 = dma.hbm_to_vmem [thread:$0]  %s2499_s0, 512, %s23_s15, [#allocation4], %s2325_s17, %s2325_s17, %s2326_s18  }
  0x28   :  { %s2327_s3 = smov [#allocation8]   ;;  %s2328_s22 = smov [#allocation11]  }
  0x29   :  { %s47_s21 = sshll.u32 %s2327_s3, 4  ;;  %s70_s23 = sshll.u32 %s2328_s22, 4  ;;  %s48_s21 = int_to_ptr.vmem [resolvable:$true] %s47_s21  ;;  %s71_s23 = int_to_ptr.vmem [resolvable:$true] %s70_s23 }
  0x2a   :  { %s2236_s24 = scalar_lea.vmem %s48_s21, 192  ;;  %p2241_p2 = scmp.lt.s32.totalorder %s48_s21, %s48_s21 }
  0x2b   :  { %p2237_p1 = scmp.ne.s32.totalorder %s48_s21, %s2236_s24  ;;  %p2242_p3 = scmp.lt.s32.totalorder %s2236_s24, %s2236_s24 }
  0x2d   :  { %p2243_p4 = por %p2242_p3, %p2241_p2 }
  0x2f   :  { %p2244_p5 = pnand %p2243_p4, %p2237_p1 }
  0x31   :  { %2247 = shalt.err (!%p2244_p5)
}
  0x32   :  { %50 = dma.hbm_to_vmem [thread:$0]  %s2501_s2, 192, %s48_s21, [#allocation7]  }
  0x33   :  { %s2256_s27 = scalar_lea.vmem %s71_s23, 5120  ;;  %p2261_p7 = scmp.lt.s32.totalorder %s71_s23, %s71_s23 }
  0x34   :  { %p2257_p6 = scmp.ne.s32.totalorder %s71_s23, %s2256_s27  ;;  %p2262_p8 = scmp.lt.s32.totalorder %s2256_s27, %s2256_s27 }
  0x36   :  { %p2263_p9 = por %p2262_p8, %p2261_p7 }
  0x38   :  { %p2264_p10 = pnand %p2263_p9, %p2257_p6 }
  0x3a   :  { %2267 = shalt.err (!%p2264_p10)
}
  0x3b   :  { %76 = dma.hbm_to_vmem [thread:$0]  %s2504_s5, 5120, %s71_s23, [#allocation10], %s2322_s11, %s2322_s11, %s2323_s12  }
  0x3c   :  { %s2329_s29 = smov [#allocation12]  }
  0x3d   :  { %s83_s30 = sshll.u32 %s2329_s29, 4  ;;  %s84_s30 = int_to_ptr.vmem [resolvable:$true] %s83_s30 }
  0x3e   :  { %s2276_s8 = scalar_lea.vmem %s84_s30, 16  ;;  %s2280_s2 = scalar_lea.vmem %s84_s30, 32 }
  0x3f   :  { %p2277_p11 = scmp.ne.s32.totalorder %s84_s30, %s2276_s8  ;;  %p2281_p12 = scmp.lt.s32.totalorder %s84_s30, %s84_s30 }
  0x40   :  { %p2282_p13 = scmp.lt.s32.totalorder %s2280_s2, %s2276_s8 }
  0x42   :  { %p2283_p0 = por %p2282_p13, %p2281_p12 }
  0x44   :  { %p2284_p1 = pnand %p2283_p0, %p2277_p11 }
  0x46   :  { %2287 = shalt.err (!%p2284_p1)
}
  0x47   :  { %86 = dma.hbm_to_vmem [thread:$0]  %s2505_s6, 16, %s84_s30, [#allocation13]  }
  0x48   :  { %2308 = dma.done.wait [#allocation4], 512  }
  0x49   :  { %2309 = vsyncadd [#allocation4], 4294966784 }
  0x4a   :  { %2310 = dma.done.wait [#allocation7], 3264  }
  0x4b   :  { %2311 = vsyncadd [#allocation7], 4294964032 }
  0x4c   :  { %2312 = dma.done.wait [#allocation10], 9216  }
  0x4d   :  { %2313 = vsyncadd [#allocation10], 4294958080 }
  0x4e   :  { %2314 = dma.done.wait [#allocation13], 16  }
  0x4f   :  { %2315 = vsyncadd [#allocation13], 4294967280  ;;  %v2330_v0 = vmov 0   ;;  %v2030_v1 = vld [vmem:[#allocation6 + $0xac] ss:$12 sps:$4 sm:$0xff]   ;;  %v106_v19 = vld [vmem:[#allocation3] sm:$0xff] }
  0x50   :  { %355 = vmatprep.mubr.bf16.mxu0 %v2330_v0  ;;  %v2032_v2 = vld [vmem:[#allocation6 + $0xb0] ss:$12 sps:$4 sm:$0xff]   ;;  %323 = vmatprep.subr.bf16.mxu0 %v2030_v1  ;;  %v2033_v3 = vld [vmem:[#allocation6 + $0xa8] ss:$12 sps:$4 sm:$0xff]   ;;  %v2036_v5 = vld [vmem:[#allocation6 + $0x98] ss:$12 sps:$4 sm:$0xff]   ;;  %v1828_v21 = vpack.c.bf16 %v106_v19, %v106_v19 }
  0x51   :  { %1976 = vmatprep.subr.bf16.mxu1 %v2032_v2  ;;  %v2034_v4 = vld [vmem:[#allocation6 + $0x94] ss:$12 sps:$4 sm:$0xff]   ;;  %324 = vmatpush1.bf16.msra.mxu0 %v2033_v3  ;;  %v2037_v6 = vld [vmem:[#allocation6 + $0x90] ss:$12 sps:$4 sm:$0xff]   ;;  %v2041_v9 = vld [vmem:[#allocation6 + $0x78] ss:$12 sps:$4 sm:$0xff]  }
  0x52   :  { %1977 = vmatpush3.bf16.msra.mxu1 %v2032_v2  ;;  %325 = vmatprep.subr.bf16.mxu0 %v2034_v4  ;;  %v2038_v7 = vld [vmem:[#allocation6 + $0x7c] ss:$12 sps:$4 sm:$0xff]   ;;  %v2040_v8 = vld [vmem:[#allocation6 + $0x80] ss:$12 sps:$4 sm:$0xff]   ;;  %v2042_v10 = vld [vmem:[#allocation6 + $0x64] ss:$12 sps:$4 sm:$0xff]   ;;  %v168_v4 = vlaneseq }
  0x53   :  { %1978 = vmatprep.subr.bf16.mxu1 %v2036_v5  ;;  %v2044_v11 = vld [vmem:[#allocation6 + $0x68] ss:$12 sps:$4 sm:$0xff]   ;;  %v2045_v12 = vld [vmem:[#allocation6 + $0x60] ss:$12 sps:$4 sm:$0xff]   ;;  %v2048_v14 = vld [vmem:[#allocation6 + $0x50] ss:$12 sps:$4 sm:$0xff]  }
  0x54   :  { %v2046_v13 = vld [vmem:[#allocation6 + $0x4c] ss:$12 sps:$4 sm:$0xff]   ;;  %v2049_v15 = vld [vmem:[#allocation6 + $0x48] ss:$12 sps:$4 sm:$0xff]   ;;  %v2053_v18 = vld [vmem:[#allocation6 + $0x30] ss:$12 sps:$4 sm:$0xff]  }
  0x55   :  { %326 = vmatpush1.bf16.msra.mxu0 %v2037_v6  ;;  %v2050_v16 = vld [vmem:[#allocation6 + $0x34] ss:$12 sps:$4 sm:$0xff]   ;;  %v2052_v17 = vld [vmem:[#allocation6 + $0x38] ss:$12 sps:$4 sm:$0xff]   ;;  %v107_v20 = vld [vmem:[#allocation3 + $0x8] sm:$0xff] }
  0x56   :  { %1979 = vmatpush3.bf16.msra.mxu1 %v2036_v5  ;;  %327 = vmatprep.subr.bf16.mxu0 %v2038_v7  ;;  %v108_v22 = vld [vmem:[#allocation3 + $0x10] sm:$0xff]  ;;  %v109_v23 = vld [vmem:[#allocation3 + $0x18] sm:$0xff]  ;;  %v2056_v25 = vld [vmem:[#allocation6 + $0x20] ss:$12 sps:$4 sm:$0xff]   ;;  %v1829_v26 = vpack.c.bf16 %v107_v20, %v107_v20  ;;  %126 = vst [vmem:[#allocation2 + $0x10] sm:$0xf] %v1828_v21 }
  0x57   :  { %1980 = vmatprep.subr.bf16.mxu1 %v2040_v8  ;;  %v2054_v24 = vld [vmem:[#allocation6 + $0x1c] ss:$12 sps:$4 sm:$0xff]   ;;  %v1830_v27 = vpack.c.bf16 %v108_v22, %v108_v22  ;;  %v1831_v28 = vpack.c.bf16 %v109_v23, %v109_v23  ;;  %v2057_v29 = vld [vmem:[#allocation6 + $0x18] ss:$12 sps:$4 sm:$0xff]   ;;  %v2061_v32 = vld [vmem:[#allocation6] ss:$12 sps:$4 sm:$0xff]  }
  0x58   :  { %127 = vst [vmem:[#allocation2 + $0x24] sm:$0xf] %v1829_v26  ;;  %v2058_v30 = vld [vmem:[#allocation6 + $0x4] ss:$12 sps:$4 sm:$0xff]   ;;  %v2060_v31 = vld [vmem:[#allocation6 + $0x8] ss:$12 sps:$4 sm:$0xff]  }
  0x59   :  { %328 = vmatpush1.bf16.msra.mxu0 %v2041_v9  ;;  %128 = vst [vmem:[#allocation2 + $0x38] sm:$0xf] %v1830_v27  ;;  %129 = vst [vmem:[#allocation2 + $0x4c] sm:$0xf] %v1831_v28  ;;  %v2067_v35 = vld [vmem:[#allocation9 + $0x78] sm:$0xff]   ;;  %v2071_v39 = vld [vmem:[#allocation9 + $0x70] sm:$0xff]  }
  0x5a   :  { %1981 = vmatpush3.bf16.msra.mxu1 %v2040_v8  ;;  %329 = vmatprep.subr.bf16.mxu0 %v2042_v10  ;;  %v2069_v36 = vld [vmem:[#allocation9 + $0x38] sm:$0xff]   ;;  %v2073_v40 = vld [vmem:[#allocation9 + $0x30] sm:$0xff]   ;;  %v2075_v43 = vld [vmem:[#allocation9 + $0x68] sm:$0xff]   ;;  %v169_v5 = vshrl.u32 %v168_v4, 7 }
  0x5b   :  { %1982 = vmatprep.subr.bf16.mxu1 %v2044_v11  ;;  %v2064_v37 = vld [vmem:[#allocation9 + $0xf8] sm:$0xff]   ;;  %v2066_v41 = vld [vmem:[#allocation9 + $0xf0] sm:$0xff]   ;;  %v2077_v44 = vld [vmem:[#allocation9 + $0x28] sm:$0xff]  }
  0x5c   :  { %v2065_v38 = vld [vmem:[#allocation9 + $0xb8] sm:$0xff]   ;;  %v2068_v42 = vld [vmem:[#allocation9 + $0xb0] sm:$0xff]   ;;  %v2070_v45 = vld [vmem:[#allocation9 + $0xe8] sm:$0xff]   ;;  %v2401_v6 = vsub.s32 0, %v169_v5  ;;  %v2403_v10 = vsub.s32 2, %v169_v5 }
  0x5d   :  { %330 = vmatpush1.bf16.msra.mxu0 %v2045_v12  ;;  %v2072_v46 = vld [vmem:[#allocation9 + $0xa8] sm:$0xff]   ;;  %v2079_v47 = vld [vmem:[#allocation9 + $0x60] sm:$0xff]   ;;  %v2083_v51 = vld [vmem:[#allocation9 + $0x58] sm:$0xff]  }
  0x5e   :  { %1983 = vmatpush3.bf16.msra.mxu1 %v2044_v11  ;;  %331 = vmatprep.subr.bf16.mxu0 %v2046_v13  ;;  %v2081_v48 = vld [vmem:[#allocation9 + $0x20] sm:$0xff]   ;;  %v2085_v52 = vld [vmem:[#allocation9 + $0x18] sm:$0xff]   ;;  %v2087_v55 = vld [vmem:[#allocation9 + $0x50] sm:$0xff]   ;;  %v2405_v11 = vsub.s32 1, %v169_v5 }
  0x5f   :  { %1984 = vmatprep.subr.bf16.mxu1 %v2048_v14  ;;  %v2062_v33 = vld [vmem:[#allocation2 + $0x10] ss:$20 sps:$4 sm:$0xff]   ;;  %v2074_v49 = vld [vmem:[#allocation9 + $0xe0] sm:$0xff]   ;;  %v2078_v53 = vld [vmem:[#allocation9 + $0xd8] sm:$0xff]  }
  0x60   :  { %v2063_v34 = vld [vmem:[#allocation2 + $0x38] ss:$20 sps:$4 sm:$0xff]   ;;  %1992 = vmatprep.mubr.bf16.mxu1 %v2062_v33  ;;  %v2076_v50 = vld [vmem:[#allocation9 + $0xa0] sm:$0xff]   ;;  %v2091_v59 = vld [vmem:[#allocation9 + $0x48] sm:$0xff]  }
  0x61   :  { %332 = vmatpush1.bf16.msra.mxu0 %v2049_v15  ;;  %v2080_v54 = vld [vmem:[#allocation9 + $0x98] sm:$0xff]   ;;  %v2089_v56 = vld [vmem:[#allocation9 + $0x10] sm:$0xff]   ;;  %v2093_v60 = vld [vmem:[#allocation9 + $0x8] sm:$0xff]  }
  0x62   :  { %1985 = vmatpush3.bf16.msra.mxu1 %v2048_v14  ;;  %333 = vmatprep.subr.bf16.mxu0 %v2050_v16  ;;  %v2082_v57 = vld [vmem:[#allocation9 + $0xd0] sm:$0xff]   ;;  %v2086_v61 = vld [vmem:[#allocation9 + $0xc8] sm:$0xff]   ;;  %v2098_v63 = vld [vmem:[#allocation9 + $0x40] sm:$0xff]  }
  0x63   :  { %1986 = vmatprep.subr.bf16.mxu1 %v2052_v17  ;;  %v2084_v58 = vld [vmem:[#allocation9 + $0x90] sm:$0xff]   ;;  %v2088_v62 = vld [vmem:[#allocation9 + $0x88] sm:$0xff]   ;;  %v2090_v1 = vld [vmem:[#allocation9 + $0xc0] sm:$0xff]  }
  0x64   :  { %v2092_v2 = vld [vmem:[#allocation9 + $0x80] sm:$0xff]   ;;  %v2097_v3 = vld [vmem:[#allocation11 + $0xf8] sm:$0xff]  }
  0x65   :  { %334 = vmatpush1.bf16.msra.mxu0 %v2053_v18  ;;  %v166_v9 = vld [vmem:[#allocation8] ss:$4 sm:$0x7] }
  0x66   :  { %1987 = vmatpush3.bf16.msra.mxu1 %v2052_v17  ;;  %335 = vmatprep.subr.bf16.mxu0 %v2054_v24  ;;  %v171_v14 = vrot.slane %v166_v9, %v2401_v6  ;;  %v179_v17 = vrot.slane %v166_v9, %v2403_v10  ;;  %v175_v18 = vrot.slane %v166_v9, %v2405_v11 }
  0x67   :  { %1988 = vmatprep.subr.bf16.mxu1 %v2056_v25 }
  0x69   :  { %336 = vmatpush1.bf16.msra.mxu0 %v2057_v29 }
  0x6a   :  { %1989 = vmatpush3.bf16.msra.mxu1 %v2056_v25  ;;  %337 = vmatprep.subr.bf16.mxu0 %v2058_v30 }
  0x6b   :  { %1990 = vmatprep.subr.bf16.mxu1 %v2060_v31 }
  0x6d   :  { %338 = vmatpush1.bf16.msra.mxu0 %v2061_v32 }
  0x6e   :  { %1991 = vmatpush3.bf16.msra.mxu1 %v2060_v31  ;;  %1854 = vmatprep.subr.bf16.mxu0 %v2067_v35 }
  0x6f   :  { %1882 = vmatprep.subr.bf16.mxu1 %v2064_v37 }
  0x70   :  { %356 = vmatmul.mubr.bf16.vlgmr.msra.gmra.mxu0 %v2062_v33 }
  0x71   :  { %1993 = vmatmul.mubr.bf16.vlgmr.msra.gmra.mxu1 %v2063_v34  ;;  %365 = vmatprep.mubr.bf16.mxu0 %v2330_v0  ;;  %v2100_v0 = vld [vmem:[#allocation9] sm:$0xff]  }
  0x72   :  { %1855 = vmatpush3.bf16.msra.mxu0 %v2069_v36  ;;  %1883 = vmatpush3.bf16.msra.mxu1 %v2065_v38 }
  0x73   :  { %1856 = vmatprep.subr.bf16.mxu0 %v2071_v39  ;;  %1884 = vmatprep.subr.bf16.mxu1 %v2066_v41 }
  0x76   :  { %1857 = vmatpush3.bf16.msra.mxu0 %v2073_v40  ;;  %1885 = vmatpush3.bf16.msra.mxu1 %v2068_v42 }
  0x77   :  { %1858 = vmatprep.subr.bf16.mxu0 %v2075_v43  ;;  %1886 = vmatprep.subr.bf16.mxu1 %v2070_v45 }
  0x78   :  { %366 = vmatmul.mubr.bf16.gmra.mxu0 %v2063_v34 }
  0x7a   :  { %1859 = vmatpush3.bf16.msra.mxu0 %v2077_v44  ;;  %1887 = vmatpush3.bf16.msra.mxu1 %v2072_v46 }
  0x7b   :  { %1860 = vmatprep.subr.bf16.mxu0 %v2079_v47  ;;  %1888 = vmatprep.subr.bf16.mxu1 %v2074_v49 }
  0x7e   :  { %1861 = vmatpush3.bf16.msra.mxu0 %v2081_v48  ;;  %1889 = vmatpush3.bf16.msra.mxu1 %v2076_v50 }
  0x7f   :  { %1862 = vmatprep.subr.bf16.mxu0 %v2083_v51  ;;  %1890 = vmatprep.subr.bf16.mxu1 %v2078_v53 }
  0x82   :  { %1863 = vmatpush3.bf16.msra.mxu0 %v2085_v52  ;;  %1891 = vmatpush3.bf16.msra.mxu1 %v2080_v54 }
  0x83   :  { %1864 = vmatprep.subr.bf16.mxu0 %v2087_v55  ;;  %1892 = vmatprep.subr.bf16.mxu1 %v2082_v57 }
  0x86   :  { %1865 = vmatpush3.bf16.msra.mxu0 %v2089_v56  ;;  %1893 = vmatpush3.bf16.msra.mxu1 %v2084_v58 }
  0x87   :  { %1866 = vmatprep.subr.bf16.mxu0 %v2091_v59  ;;  %1894 = vmatprep.subr.bf16.mxu1 %v2086_v61 }
  0x8a   :  { %1867 = vmatpush3.bf16.msra.mxu0 %v2093_v60  ;;  %1895 = vmatpush3.bf16.msra.mxu1 %v2088_v62 }
  0x8b   :  { %1868 = vmatprep.subr.bf16.mxu0 %v2098_v63  ;;  %1896 = vmatprep.subr.bf16.mxu1 %v2090_v1 }
  0x8e   :  { %1869 = vmatpush3.bf16.msra.mxu0 %v2100_v0  ;;  %1897 = vmatpush3.bf16.msra.mxu1 %v2092_v2 }
  0x8f   :  { %1938 = vmatprep.subr.bf16.mxu1 %v2097_v3 }
 0x130   :  { %v357_v7 = vpop.f32.mrf.mxu0 }
 0x131   :  { %v1994_v8 = vpop.f32.mrf.mxu1  ;;  %v358_v24 = vadd.f32 %v357_v7, %v171_v14 }
 0x132   :  { %v359_v12 = vpop.f32.mrf.mxu0  ;;  %v419_v26 = vadd.f32 %v1994_v8, %v179_v17 }
 0x133   :  { %v410_v13 = vpop.f32.mrf.mxu1  ;;  %v360_v30 = vadd.f32 %v359_v12, %v175_v18 }
 0x134   :  { %v361_v15 = vpop.f32.mrf.mxu0  ;;  %v411_v21 = vadd.f32 %v410_v13, %v179_v17 }
 0x135   :  { %v1995_v16 = vpop.f32.mrf.mxu1  ;;  %v362_v22 = vadd.f32 %v361_v15, %v171_v14 }
 0x136   :  { %v363_v19 = vpop.f32.mrf.mxu0  ;;  %v422_v33 = vadd.f32 %v1995_v16, %v179_v17 }
 0x137   :  { %v413_v20 = vpop.f32.mrf.mxu1  ;;  %v364_v27 = vadd.f32 %v363_v19, %v175_v18  ;;  %v425_v32 = vadd.f32 %v362_v22, %v358_v24 }
 0x138   :  { %v414_v23 = vadd.f32 %v413_v20, %v179_v17  ;;  %v367_v25 = vpop.f32.mrf.mxu0 }
 0x139   :  { %v368_v29 = vadd.f32 %v367_v25, %v171_v14  ;;  %v434_v37 = vadd.f32 %v364_v27, %v360_v30 }
 0x13a   :  { %v443_v28 = vadd.f32 %v414_v23, %v411_v21  ;;  %v369_v31 = vpop.f32.mrf.mxu0 }
 0x13b   :  { %v370_v35 = vadd.f32 %v369_v31, %v175_v18  ;;  %v426_v39 = vadd.f32 %v425_v32, %v368_v29 }
 0x13c   :  { %v444_v34 = vadd.f32 %v443_v28, %v419_v26  ;;  %v371_v36 = vpop.f32.mrf.mxu0 }
 0x13d   :  { %v372_v40 = vadd.f32 %v371_v36, %v171_v14  ;;  %v435_v43 = vadd.f32 %v434_v37, %v370_v35 }
 0x13e   :  { %v445_v38 = vadd.f32 %v444_v34, %v422_v33  ;;  %v373_v41 = vpop.f32.mrf.mxu0 }
 0x13f   :  { %v427_v44 = vadd.f32 %v426_v39, %v372_v40  ;;  %v374_v45 = vadd.f32 %v373_v41, %v175_v18 }
 0x140   :  { %v446_v42 = vrot.slane %v445_v38, 4 }
 0x141   :  { %v428_v47 = vrot.slane %v427_v44, 4  ;;  %v436_v48 = vadd.f32 %v435_v43, %v374_v45 }
 0x142   :  { %v447_v46 = vadd.f32 %v446_v42, %v445_v38 }
 0x143   :  { %v429_v50 = vadd.f32 %v428_v47, %v427_v44  ;;  %v437_v51 = vrot.slane %v436_v48, 4 }
 0x144   :  { %v448_v49 = vrot.slane %v447_v46, 2 }
 0x145   :  { %v430_v53 = vrot.slane %v429_v50, 2  ;;  %v438_v54 = vadd.f32 %v437_v51, %v436_v48 }
 0x146   :  { %v449_v52 = vadd.f32 %v448_v49, %v447_v46 }
 0x147   :  { %v431_v56 = vadd.f32 %v430_v53, %v429_v50  ;;  %v439_v57 = vrot.slane %v438_v54, 2 }
 0x148   :  { %v450_v55 = vrot.slane %v449_v52, 1 }
 0x149   :  { %v432_v59 = vrot.slane %v431_v56, 1  ;;  %v440_v60 = vadd.f32 %v439_v57, %v438_v54 }
 0x14a   :  { %v451_v58 = vadd.f32 %v450_v55, %v449_v52 }
 0x14b   :  { %v433_v62 = vadd.f32 %v432_v59, %v431_v56  ;;  %v441_v63 = vrot.slane %v440_v60, 1 }
 0x14c   :  { %v455_v61 = vmul.f32 0.03125, %v451_v58 }
 0x14d   :  { %v453_v4 = vmul.f32 0.03125, %v433_v62  ;;  %v442_v5 = vadd.f32 %v441_v63, %v440_v60  ;;  %v517_v63 = vld [vmem:[#allocation8 + $0x1] ss:$4 sm:$0x7] }
 0x14e   :  { %v2410_v0 = vsub.f32 %v411_v21, %v455_v61  ;;  %v2412_v1 = vsub.f32 %v414_v23, %v455_v61  ;;  %v2414_v2 = vsub.f32 %v419_v26, %v455_v61  ;;  %v2416_v3 = vsub.f32 %v422_v33, %v455_v61 }
 0x14f   :  { %v2422_v9 = vsub.f32 %v358_v24, %v453_v4  ;;  %v2424_v12 = vsub.f32 %v362_v22, %v453_v4  ;;  %v2426_v13 = vsub.f32 %v368_v29, %v453_v4  ;;  %v454_v16 = vmul.f32 0.03125, %v442_v5 }
 0x150   :  { %v470_v7 = vmul.f32 %v2410_v0, %v2410_v0  ;;  %v473_v8 = vmul.f32 %v2412_v1, %v2412_v1  ;;  %v476_v14 = vmul.f32 %v2414_v2, %v2414_v2  ;;  %v479_v17 = vmul.f32 %v2416_v3, %v2416_v3 }
 0x151   :  { %v2432_v18 = vsub.f32 %v372_v40, %v453_v4  ;;  %v468_v19 = vmul.f32 %v2422_v9, %v2422_v9  ;;  %v471_v20 = vmul.f32 %v2424_v12, %v2424_v12  ;;  %v2438_v22 = vsub.f32 %v360_v30, %v454_v16 }
 0x152   :  { %v498_v15 = vadd.f32 %v473_v8, %v470_v7  ;;  %v2440_v23 = vsub.f32 %v364_v27, %v454_v16  ;;  %v2442_v24 = vsub.f32 %v370_v35, %v454_v16  ;;  %v474_v25 = vmul.f32 %v2426_v13, %v2426_v13  ;;  %v562_v7 = vld [vmem:[#allocation8 + $0x2] ss:$4 sm:$0x7] }
 0x153   :  { %v480_v26 = vadd.f32 %v471_v20, %v468_v19  ;;  %v2446_v29 = vsub.f32 %v374_v45, %v454_v16  ;;  %v469_v31 = vmul.f32 %v2438_v22, %v2438_v22  ;;  %v477_v30 = vmul.f32 %v2432_v18, %v2432_v18 }
 0x154   :  { %v499_v21 = vadd.f32 %v498_v15, %v476_v14  ;;  %v472_v32 = vmul.f32 %v2440_v23, %v2440_v23  ;;  %v475_v34 = vmul.f32 %v2442_v24, %v2442_v24  ;;  %v530_v4 = vrot.slane %v517_v63, %v2403_v10 }
 0x155   :  { %v481_v27 = vadd.f32 %v480_v26, %v474_v25  ;;  %v478_v38 = vmul.f32 %v2446_v29, %v2446_v29  ;;  %v522_v8 = vrot.slane %v517_v63, %v2401_v6 }
 0x156   :  { %v500_v28 = vadd.f32 %v499_v21, %v479_v17  ;;  %v489_v35 = vadd.f32 %v472_v32, %v469_v31  ;;  %v575_v17 = vrot.slane %v562_v7, %v2403_v10 }
 0x157   :  { %v482_v36 = vadd.f32 %v481_v27, %v477_v30 }
 0x158   :  { %v501_v33 = vrot.slane %v500_v28, 4  ;;  %v490_v39 = vadd.f32 %v489_v35, %v475_v34 }
 0x159   :  { %v483_v40 = vrot.slane %v482_v36, 4 }
 0x15a   :  { %v502_v37 = vadd.f32 %v501_v33, %v500_v28  ;;  %v491_v42 = vadd.f32 %v490_v39, %v478_v38  ;;  %v526_v33 = vrot.slane %v517_v63, %v2405_v11 }
 0x15b   :  { %v484_v43 = vadd.f32 %v483_v40, %v482_v36 }
 0x15c   :  { %v503_v41 = vrot.slane %v502_v37, 2  ;;  %v492_v45 = vrot.slane %v491_v42, 4 }
 0x15d   :  { %v485_v46 = vrot.slane %v484_v43, 2 }
 0x15e   :  { %v504_v44 = vadd.f32 %v503_v41, %v502_v37  ;;  %v493_v48 = vadd.f32 %v492_v45, %v491_v42 }
 0x15f   :  { %v486_v49 = vadd.f32 %v485_v46, %v484_v43 }
 0x160   :  { %v505_v47 = vrot.slane %v504_v44, 1  ;;  %v494_v51 = vrot.slane %v493_v48, 2 }
 0x161   :  { %v487_v52 = vrot.slane %v486_v49, 1 }
 0x162   :  { %v506_v50 = vadd.f32 %v505_v47, %v504_v44  ;;  %v495_v54 = vadd.f32 %v494_v51, %v493_v48 }
 0x163   :  { %v488_v55 = vadd.f32 %v487_v52, %v486_v49 }
 0x164   :  { %v509_v53 = vmul.f32 0.03125, %v506_v50  ;;  %v496_v57 = vrot.slane %v495_v54, 1 }
 0x165   :  { %v507_v58 = vmul.f32 0.03125, %v488_v55 }
 0x166   :  { %v512_v56 = vadd.f32 1e-05, %v509_v53  ;;  %v497_v59 = vadd.f32 %v496_v57, %v495_v54 }
 0x167   :  { %v510_v60 = vadd.f32 1e-05, %v507_v58 }
 0x168   :  { %2156 = vrsqrt.f32 %v512_v56  ;;  %v508_v61 = vmul.f32 0.03125, %v497_v59  ;;  %v2099_v56 = vld [vmem:[#allocation11 + $0xb8] sm:$0xff]  }
 0x169   :  { %2158 = vrsqrt.f32 %v510_v60 }
 0x16a   :  { %v511_v62 = vadd.f32 1e-05, %v508_v61 }
 0x16c   :  { %2160 = vrsqrt.f32 %v511_v62  ;;  %v2096_v62 = vld [vmem:[#allocation2 + $0x10] ss:$20 sps:$4 sm:$0xff]  }
 0x16d   :  { %1041 = vmatprep.mubr.bf16.mxu1 %v2096_v62 }
 0x175   :  { %v2157_v5 = vpop.eup %2156 }
 0x176   :  { %v536_v14 = vmul.f32 %v2157_v5, %v530_v4  ;;  %v2159_v15 = vpop.eup %2158  ;;  %v2101_v5 = vld [vmem:[#allocation2 + $0x38] ss:$20 sps:$4 sm:$0xff]  }
 0x177   :  { %v534_v19 = vmul.f32 %v2159_v15, %v522_v8  ;;  %v2105_v15 = vld [vmem:[#allocation11 + $0xe8] sm:$0xff]  }
 0x178   :  { %v548_v16 = vrot.slane %v536_v14, %v2401_v6  ;;  %v2104_v14 = vld [vmem:[#allocation11 + $0xb0] sm:$0xff]  }
 0x179   :  { %v540_v28 = vrot.slane %v534_v19, %v2401_v6  ;;  %v2161_v37 = vpop.eup %2160 }
 0x17a   :  { %v551_v20 = vmul.f32 %v548_v16, %v2410_v0  ;;  %v554_v21 = vmul.f32 %v548_v16, %v2412_v1  ;;  %v557_v25 = vmul.f32 %v548_v16, %v2414_v2  ;;  %v560_v26 = vmul.f32 %v548_v16, %v2416_v3 }
 0x17b   :  { %v549_v0 = vmul.f32 %v540_v28, %v2422_v9  ;;  %v552_v1 = vmul.f32 %v540_v28, %v2424_v12  ;;  %v567_v2 = vrot.slane %v562_v7, %v2401_v6  ;;  %v555_v41 = vmul.f32 %v540_v28, %v2426_v13 }
 0x17c   :  { %v581_v31 = vadd.f32 %v575_v17, %v551_v20  ;;  %v584_v32 = vadd.f32 %v575_v17, %v554_v21  ;;  %v587_v30 = vadd.f32 %v575_v17, %v557_v25  ;;  %v590_v27 = vadd.f32 %v575_v17, %v560_v26  ;;  %v2107_v17 = vld [vmem:[#allocation11 + $0xa8] sm:$0xff]   ;;  %v2111_v20 = vld [vmem:[#allocation11 + $0xe0] sm:$0xff]  }
 0x17d   :  { %v558_v42 = vmul.f32 %v540_v28, %v2432_v18  ;;  %v535_v43 = vmul.f32 %v2161_v37, %v526_v33  ;;  %v579_v44 = vadd.f32 %v567_v2, %v549_v0  ;;  %v582_v45 = vadd.f32 %v567_v2, %v552_v1  ;;  %v2112_v21 = vld [vmem:[#allocation11 + $0xa0] sm:$0xff]   ;;  %v2113_v28 = vld [vmem:[#allocation11 + $0xd8] sm:$0xff]   ;;  %v2118_v33 = vld [vmem:[#allocation11 + $0x88] sm:$0xff]  }
 0x17e   :  { %v593_v34 = vmax.f32 %v581_v31, 0.0  ;;  %v596_v35 = vmax.f32 %v584_v32, 0.0  ;;  %v599_v10 = vmax.f32 %v587_v30, 0.0  ;;  %v602_v36 = vmax.f32 %v590_v27, 0.0  ;;  %v2114_v31 = vld [vmem:[#allocation11 + $0x98] sm:$0xff]   ;;  %v2115_v32 = vld [vmem:[#allocation11 + $0xd0] sm:$0xff]  }
 0x17f   :  { %v544_v9 = vrot.slane %v535_v43, %v2401_v6  ;;  %v571_v12 = vrot.slane %v562_v7, %v2405_v11  ;;  %v585_v46 = vadd.f32 %v567_v2, %v555_v41  ;;  %v588_v47 = vadd.f32 %v567_v2, %v558_v42  ;;  %v2116_v30 = vld [vmem:[#allocation11 + $0x90] sm:$0xff]   ;;  %v2117_v27 = vld [vmem:[#allocation11 + $0xc8] sm:$0xff]   ;;  %v2124_v0 = vld [vmem:[#allocation11 + $0x78] sm:$0xff]  }
 0x180   :  { %v1833_v3 = vpack.c.bf16 %v593_v34, %v593_v34  ;;  %v1835_v38 = vpack.c.bf16 %v596_v35, %v596_v35  ;;  %v1837_v39 = vpack.c.bf16 %v599_v10, %v599_v10  ;;  %v1839_v40 = vpack.c.bf16 %v602_v36, %v602_v36  ;;  %v2119_v34 = vld [vmem:[#allocation11 + $0xc0] sm:$0xff]   ;;  %v2125_v1 = vld [vmem:[#allocation11 + $0x38] sm:$0xff]   ;;  %1910 = vmatprep.subr.bf16.mxu0 %v2124_v0  ;;  %v2126_v2 = vld [vmem:[#allocation11 + $0x70] sm:$0xff]  }
 0x181   :  { %v550_v48 = vmul.f32 %v544_v9, %v2438_v22  ;;  %v553_v49 = vmul.f32 %v544_v9, %v2440_v23  ;;  %v556_v13 = vmul.f32 %v544_v9, %v2442_v24  ;;  %v559_v18 = vmul.f32 %v544_v9, %v2446_v29  ;;  %v2103_v23 = vld [vmem:[#allocation11 + $0xf0] sm:$0xff]   ;;  %v2120_v35 = vld [vmem:[#allocation11 + $0x80] sm:$0xff]   ;;  %v2132_v42 = vld [vmem:[#allocation11 + $0x58] sm:$0xff]  }
 0x182   :  { %644 = vst [vmem:[#allocation2 + $0xc] sm:$0xf] %v1833_v3  ;;  %646 = vst [vmem:[#allocation2 + $0x20] sm:$0xf] %v1835_v38  ;;  %v591_v50 = vmax.f32 %v579_v44, 0.0  ;;  %v594_v51 = vmax.f32 %v582_v45, 0.0 }
 0x183   :  { %648 = vst [vmem:[#allocation2 + $0x34] sm:$0xf] %v1837_v39  ;;  %650 = vst [vmem:[#allocation2 + $0x48] sm:$0xf] %v1839_v40  ;;  %v580_v52 = vadd.f32 %v571_v12, %v550_v48  ;;  %v583_v53 = vadd.f32 %v571_v12, %v553_v49  ;;  %v586_v54 = vadd.f32 %v571_v12, %v556_v13  ;;  %v597_v57 = vmax.f32 %v585_v46, 0.0  ;;  %v2127_v3 = vld [vmem:[#allocation11 + $0x30] sm:$0xff]  }
 0x184   :  { %v589_v55 = vadd.f32 %v571_v12, %v559_v18  ;;  %v600_v58 = vmax.f32 %v588_v47, 0.0  ;;  %v2164_v7 = vpack.c.bf16 %v594_v51, %v591_v50  ;;  %v2128_v38 = vld [vmem:[#allocation11 + $0x68] sm:$0xff]   ;;  %v2130_v40 = vld [vmem:[#allocation11 + $0x60] sm:$0xff]   ;;  %v2133_v43 = vld [vmem:[#allocation11 + $0x18] sm:$0xff]  }
 0x185   :  { %v592_v59 = vmax.f32 %v580_v52, 0.0  ;;  %v595_v60 = vmax.f32 %v583_v53, 0.0  ;;  %v598_v61 = vmax.f32 %v586_v54, 0.0  ;;  %v2129_v39 = vld [vmem:[#allocation11 + $0x28] sm:$0xff]   ;;  %v2131_v41 = vld [vmem:[#allocation11 + $0x20] sm:$0xff]   ;;  %v2134_v44 = vld [vmem:[#allocation11 + $0x50] sm:$0xff]  }
 0x186   :  { %v601_v22 = vmax.f32 %v589_v55, 0.0  ;;  %v2167_v26 = vpack.c.bf16 %v600_v58, %v597_v57  ;;  %v2135_v45 = vld [vmem:[#allocation11 + $0x10] sm:$0xff]   ;;  %v2136_v9 = vld [vmem:[#allocation11 + $0x48] sm:$0xff]   ;;  %v2138_v46 = vld [vmem:[#allocation11 + $0x40] sm:$0xff]  }
 0x187   :  { %v1832_v63 = vpack.c.bf16 %v592_v59, %v591_v50  ;;  %v1834_v24 = vpack.c.bf16 %v595_v60, %v594_v51  ;;  %v1836_v4 = vpack.c.bf16 %v598_v61, %v597_v57  ;;  %v2165_v8 = vpack.c.bf16 %v595_v60, %v592_v59  ;;  %v2137_v12 = vld [vmem:[#allocation11 + $0x8] sm:$0xff]   ;;  %v2139_v47 = vld [vmem:[#allocation11] sm:$0xff]   ;;  %v2479_v48 = vld [vmem:[#allocation11 + $0x138] sm:$0xff]  }
 0x188   :  { %v1838_v29 = vpack.c.bf16 %v601_v22, %v600_v58  ;;  %v2166_v16 = vpack.c.bf16 %v601_v22, %v598_v61 }
 0x189   :  { %v2094_v11 = vld [vmem:[#allocation2 + $0xc] ss:$20 sps:$4 sm:$0xff]   ;;  %643 = vst [vmem:[#allocation2 + $0x4] sm:$0xff] %v1832_v63  ;;  %645 = vst [vmem:[#allocation2 + $0x18] sm:$0xff] %v1834_v24  ;;  %992 = vmatprep.mubr.bf16.mxu0 %v2165_v8 }
 0x18a   :  { %1042 = vmatmul.mubr.bf16.vlgmr.msra.gmra.mxu1 %v2094_v11  ;;  %647 = vst [vmem:[#allocation2 + $0x2c] sm:$0xff] %v1836_v4  ;;  %649 = vst [vmem:[#allocation2 + $0x40] sm:$0xff] %v1838_v29  ;;  %993 = vmatmul.mubr.bf16.vlgmr.msra.gmra.mxu0 %v2164_v7  ;;  %v2106_v19 = vld [vmem:[#allocation2 + $0x34] ss:$20 sps:$4 sm:$0xff]   ;;  %v2110_v25 = vld [vmem:[#allocation2 + $0xc] ss:$20 sps:$4 sm:$0xff]  }
 0x18b   :  { %1939 = vmatpush3.bf16.msra.mxu1 %v2099_v56  ;;  %1049 = vmatprep.mubr.bf16.mxu1 %v2101_v5  ;;  %v2121_v36 = vld [vmem:[#allocation2 + $0x34] ss:$20 sps:$4 sm:$0xff]   ;;  %v1731_v11 = vld [vmem:[%s2503_s4] ss:$0 sm:$0xff] }
 0x18c   :  { %1940 = vmatprep.subr.bf16.mxu1 %v2103_v23  ;;  %1000 = vmatprep.mubr.bf16.mxu0 %v2166_v16 }
 0x18d   :  { %1911 = vmatpush3.bf16.msra.mxu0 %v2125_v1 }
 0x18e   :  { %1912 = vmatprep.subr.bf16.mxu0 %v2126_v2 }
 0x18f   :  { %1941 = vmatpush3.bf16.msra.mxu1 %v2104_v14 }
 0x190   :  { %1942 = vmatprep.subr.bf16.mxu1 %v2105_v15  ;;  %v2108_v10 = vld [vmem:[#allocation2 + $0x8] ss:$20 sps:$4 sm:$0xff]  }
 0x191   :  { %v2123_v37 = vld [vmem:[#allocation2 + $0x30] ss:$20 sps:$4 sm:$0xff]   ;;  %1913 = vmatpush3.bf16.msra.mxu0 %v2127_v3 }
 0x192   :  { %1050 = vmatmul.mubr.bf16.gmra.mxu1 %v2106_v19  ;;  %1001 = vmatmul.mubr.bf16.gmra.mxu0 %v2167_v26 }
 0x193   :  { %1943 = vmatpush3.bf16.msra.mxu1 %v2107_v17  ;;  %1603 = vmatprep.mubr.bf16.mxu1 %v2110_v25 }
 0x194   :  { %1944 = vmatprep.subr.bf16.mxu1 %v2111_v20  ;;  %1914 = vmatprep.subr.bf16.mxu0 %v2128_v38 }
 0x195   :  { %1915 = vmatpush3.bf16.msra.mxu0 %v2129_v39 }
 0x196   :  { %1916 = vmatprep.subr.bf16.mxu0 %v2130_v40 }
 0x197   :  { %1945 = vmatpush3.bf16.msra.mxu1 %v2112_v21 }
 0x198   :  { %1946 = vmatprep.subr.bf16.mxu1 %v2113_v28 }
 0x199   :  { %1917 = vmatpush3.bf16.msra.mxu0 %v2131_v41 }
 0x19a   :  { %1918 = vmatprep.subr.bf16.mxu0 %v2132_v42 }
 0x19b   :  { %1947 = vmatpush3.bf16.msra.mxu1 %v2114_v31 }
 0x19c   :  { %1948 = vmatprep.subr.bf16.mxu1 %v2115_v32 }
 0x19d   :  { %1919 = vmatpush3.bf16.msra.mxu0 %v2133_v43 }
 0x19e   :  { %1920 = vmatprep.subr.bf16.mxu0 %v2134_v44 }
 0x19f   :  { %1949 = vmatpush3.bf16.msra.mxu1 %v2116_v30 }
 0x1a0   :  { %1950 = vmatprep.subr.bf16.mxu1 %v2117_v27 }
 0x1a1   :  { %1921 = vmatpush3.bf16.msra.mxu0 %v2135_v45 }
 0x1a2   :  { %1922 = vmatprep.subr.bf16.mxu0 %v2136_v9 }
 0x1a3   :  { %1951 = vmatpush3.bf16.msra.mxu1 %v2118_v33 }
 0x1a4   :  { %1952 = vmatprep.subr.bf16.mxu1 %v2119_v34 }
 0x1a5   :  { %1923 = vmatpush3.bf16.msra.mxu0 %v2137_v12 }
 0x1a6   :  { %1924 = vmatprep.subr.bf16.mxu0 %v2138_v46 }
 0x1a7   :  { %1953 = vmatpush3.bf16.msra.mxu1 %v2120_v35 }
 0x1a9   :  { %1925 = vmatpush3.bf16.msra.mxu0 %v2139_v47 }
 0x1aa   :  { %1604 = vmatmul.mubr.bf16.vlgmr.msra.gmra.mxu1 %v2108_v10  ;;  %1996 = vmatprep.subr.bf16.mxu0 %v2479_v48 }
 0x1ab   :  { %1611 = vmatprep.mubr.bf16.mxu1 %v2121_v36 }
 0x1b2   :  { %1612 = vmatmul.mubr.bf16.gmra.mxu1 %v2123_v37 }
 0x24a   :  { %v1898_v49 = vpop.f32.mrf.mxu1  ;;  %v1870_v18 = vpop.f32.mrf.mxu0 }
 0x24c   :  { %v1899_v13 = vpop.f32.mrf.mxu1  ;;  %v1871_v51 = vpop.f32.mrf.mxu0 }
 0x24d   :  { %v1872_v57 = vadd.f32 %v1871_v51, %v1870_v18  ;;  %v1900_v23 = vadd.f32 %v1899_v13, %v1898_v49  ;;  %v1088_v49 = vld [vmem:[%s2503_s4 + $0x1] sm:$0x1]  ;;  %v1772_v51 = vld [vmem:[%s2503_s4 + $0x2] ss:$0 sm:$0xff]  ;;  %s2331_s4 = smov [#allocation14]  }
 0x24e   :  { %v1901_v50 = vpop.f32.mrf.mxu1  ;;  %v1873_v53 = vpop.f32.mrf.mxu0  ;;  %s1678_s1 = sshll.u32 %s2331_s4, 4  ;;  %s1679_s1 = int_to_ptr.vmem [resolvable:$true] %s1678_s1 }
 0x24f   :  { %v995_v63 = vadd.f32 %v1872_v57, %v1731_v11  ;;  %s2288_s15 = scalar_lea.vmem %s1679_s1, 512  ;;  %p2293_p3 = scmp.lt.s32.totalorder %s1679_s1, %s1679_s1 }
 0x250   :  { %v1902_v52 = vpop.f32.mrf.mxu1  ;;  %v1874_v55 = vpop.f32.mrf.mxu0  ;;  %p2289_p2 = scmp.ne.s32.totalorder %s1679_s1, %s2288_s15  ;;  %p2294_p4 = scmp.lt.s32.totalorder %s2288_s15, %s2288_s15 }
 0x251   :  { %v1875_v58 = vadd.f32 %v1874_v55, %v1873_v53  ;;  %v1903_v61 = vadd.f32 %v1902_v52, %v1901_v50  ;;  %v1044_v15 = vadd.f32 %v1900_v23, %v995_v63 }
 0x252   :  { %v1904_v54 = vpop.f32.mrf.mxu1  ;;  %v1876_v59 = vpop.f32.mrf.mxu0  ;;  %p2295_p5 = por %p2294_p4, %p2293_p3 }
 0x253   :  { %v998_v22 = vadd.f32 %v1875_v58, %v1731_v11 }
 0x254   :  { %v1905_v56 = vpop.f32.mrf.mxu1  ;;  %v1877_v62 = vpop.f32.mrf.mxu0  ;;  %p2296_p6 = pnand %p2295_p5, %p2289_p2 }
 0x255   :  { %v1906_v24 = vadd.f32 %v1905_v56, %v1904_v54  ;;  %v1878_v4 = vadd.f32 %v1877_v62, %v1876_v59  ;;  %v1047_v7 = vadd.f32 %v1903_v61, %v998_v22 }
 0x256   :  { %v1907_v60 = vpop.f32.mrf.mxu1  ;;  %v1879_v5 = vpop.f32.mrf.mxu0 }
 0x257   :  { %v1003_v8 = vadd.f32 %v1878_v4, %v1731_v11  ;;  %v1058_v20 = vadd.f32 %v1047_v7, %v1044_v15  ;;  %v2142_v4 = vld [vmem:[#allocation2 + $0x4] ss:$20 sps:$4 sm:$0xff]  }
 0x258   :  { %v1908_v29 = vpop.f32.mrf.mxu1  ;;  %v1880_v14 = vpop.f32.mrf.mxu0  ;;  %1554 = vmatprep.mubr.bf16.mxu0 %v2142_v4 }
 0x259   :  { %v1052_v16 = vadd.f32 %v1906_v24, %v1003_v8  ;;  %v1909_v17 = vadd.f32 %v1908_v29, %v1907_v60  ;;  %v1881_v19 = vadd.f32 %v1880_v14, %v1879_v5  ;;  %v2146_v29 = vld [vmem:[#allocation11 + $0x130] sm:$0xff]  }
 0x25a   :  { %v2144_v5 = vld [vmem:[#allocation2 + $0x2c] ss:$20 sps:$4 sm:$0xff]   ;;  %v2154_v8 = vld [vmem:[#allocation2 + $0x10] ss:$20 sps:$4 sm:$0xff]  }
 0x25b   :  { %v1006_v21 = vadd.f32 %v1881_v19, %v1731_v11  ;;  %v1059_v25 = vadd.f32 %v1058_v20, %v1052_v16  ;;  %v2152_v19 = vld [vmem:[#allocation11 + $0x108] sm:$0xff]   ;;  %v2155_v20 = vld [vmem:[#allocation2 + $0x38] ss:$20 sps:$4 sm:$0xff]  }
 0x25d   :  { %v1055_v26 = vadd.f32 %v1909_v17, %v1006_v21  ;;  %v2151_v17 = vld [vmem:[#allocation11 + $0x110] sm:$0xff]  }
 0x25f   :  { %v1060_v28 = vadd.f32 %v1059_v25, %v1055_v26 }
 0x261   :  { %v1061_v31 = vrot.slane %v1060_v28, 4 }
 0x263   :  { %v1062_v32 = vadd.f32 %v1061_v31, %v1060_v28 }
 0x265   :  { %v1063_v30 = vrot.slane %v1062_v32, 2 }
 0x267   :  { %v1064_v27 = vadd.f32 %v1063_v30, %v1062_v32 }
 0x269   :  { %v1065_v33 = vrot.slane %v1064_v27, 1 }
 0x26a   :  { %v1954_v25 = vpop.f32.mrf.mxu1 }
 0x26b   :  { %v1066_v34 = vadd.f32 %v1065_v33, %v1064_v27 }
 0x26c   :  { %v1955_v31 = vpop.f32.mrf.mxu1 }
 0x26d   :  { %v1067_v35 = vmul.f32 0.03125, %v1066_v34 }
 0x26e   :  { %v1957_v30 = vpop.f32.mrf.mxu1 }
 0x26f   :  { %v1068_v10 = vsub.f32 %v1044_v15, %v1067_v35  ;;  %v1069_v36 = vsub.f32 %v1047_v7, %v1067_v35  ;;  %v1070_v37 = vsub.f32 %v1052_v16, %v1067_v35  ;;  %v1071_v0 = vsub.f32 %v1055_v26, %v1067_v35  ;;  %v2147_v7 = vld [vmem:[#allocation11 + $0x128] sm:$0xff]   ;;  %v2149_v15 = vld [vmem:[#allocation11 + $0x120] sm:$0xff]   ;;  %v2150_v16 = vld [vmem:[#allocation11 + $0x118] sm:$0xff]  }
 0x270   :  { %v1958_v33 = vpop.f32.mrf.mxu1 }
 0x271   :  { %v1072_v1 = vmul.f32 %v1068_v10, %v1068_v10  ;;  %v1073_v2 = vmul.f32 %v1069_v36, %v1069_v36  ;;  %v1074_v3 = vmul.f32 %v1070_v37, %v1070_v37  ;;  %v1075_v39 = vmul.f32 %v1071_v0, %v1071_v0 }
 0x272   :  { %v1960_v35 = vpop.f32.mrf.mxu1 }
 0x273   :  { %v1076_v38 = vadd.f32 %v1073_v2, %v1072_v1 }
 0x275   :  { %v1077_v40 = vadd.f32 %v1076_v38, %v1074_v3  ;;  %v1777_v3 = vld [vmem:[#allocation12] ss:$0 sm:$0xff] }
 0x277   :  { %v1078_v41 = vadd.f32 %v1077_v40, %v1075_v39 }
 0x279   :  { %v1079_v42 = vrot.slane %v1078_v41, 4 }
 0x27b   :  { %v1080_v43 = vadd.f32 %v1079_v42, %v1078_v41 }
 0x27d   :  { %v1081_v44 = vrot.slane %v1080_v43, 2 }
 0x27f   :  { %v1082_v45 = vadd.f32 %v1081_v44, %v1080_v43  ;;  %v1956_v44 = vadd.f32 %v1955_v31, %v1954_v25 }
 0x281   :  { %v1083_v9 = vrot.slane %v1082_v45, 1 }
 0x283   :  { %v1084_v12 = vadd.f32 %v1083_v9, %v1082_v45 }
 0x285   :  { %v1085_v46 = vmul.f32 0.03125, %v1084_v12 }
 0x287   :  { %v1086_v47 = vadd.f32 1e-05, %v1085_v46 }
 0x289   :  { %2162 = vrsqrt.f32 %v1086_v47 }
 0x296   :  { %v2163_v13 = vpop.eup %2162 }
 0x297   :  { %v1089_v18 = vmul.f32 %v2163_v13, %v1088_v49 }
 0x299   :  { %v1093_v50 = vrot.slane %v1089_v18, %v2401_v6 }
 0x29b   :  { %v1094_v52 = vmul.f32 %v1093_v50, %v1068_v10  ;;  %v1095_v53 = vmul.f32 %v1093_v50, %v1069_v36  ;;  %v1096_v54 = vmul.f32 %v1093_v50, %v1070_v37  ;;  %v1097_v55 = vmul.f32 %v1093_v50, %v1071_v0  ;;  %v1961_v36 = vpop.f32.mrf.mxu1 }
 0x29c   :  { %v1962_v40 = vadd.f32 %v1961_v36, %v1960_v35  ;;  %v1959_v50 = vadd.f32 %v1958_v33, %v1957_v30 }
 0x29d   :  { %v1103_v56 = vadd.f32 %v1772_v51, %v1094_v52  ;;  %v1104_v57 = vadd.f32 %v1772_v51, %v1095_v53  ;;  %v1105_v58 = vadd.f32 %v1772_v51, %v1096_v54  ;;  %v1106_v11 = vadd.f32 %v1772_v51, %v1097_v55  ;;  %v1963_v2 = vpop.f32.mrf.mxu1 }
 0x29f   :  { %v1107_v59 = vmax.f32 %v1103_v56, 0.0  ;;  %v1108_v60 = vmax.f32 %v1104_v57, 0.0  ;;  %v1109_v61 = vmax.f32 %v1105_v58, 0.0  ;;  %v1110_v22 = vmax.f32 %v1106_v11, 0.0  ;;  %v1964_v43 = vpop.f32.mrf.mxu1 }
 0x2a0   :  { %v1965_v46 = vadd.f32 %v1964_v43, %v1963_v2 }
 0x2a1   :  { %v1840_v62 = vpack.c.bf16 %v1107_v59, %v1107_v59  ;;  %v1841_v23 = vpack.c.bf16 %v1108_v60, %v1108_v60  ;;  %v1842_v63 = vpack.c.bf16 %v1109_v61, %v1109_v61  ;;  %v1843_v6 = vpack.c.bf16 %v1110_v22, %v1110_v22 }
 0x2a3   :  { %1127 = vst [vmem:[#allocation2] sm:$0xf] %v1840_v62  ;;  %1128 = vst [vmem:[#allocation2 + $0x14] sm:$0xf] %v1841_v23 }
 0x2a4   :  { %1129 = vst [vmem:[#allocation2 + $0x28] sm:$0xf] %v1842_v63  ;;  %1130 = vst [vmem:[#allocation2 + $0x3c] sm:$0xf] %v1843_v6 }
 0x2aa   :  { %v2140_v24 = vld [vmem:[#allocation2] ss:$20 sps:$4 sm:$0xff]  }
 0x2ab   :  { %1555 = vmatmul.mubr.bf16.vlgmr.msra.gmra.mxu0 %v2140_v24  ;;  %v2148_v14 = vld [vmem:[#allocation2 + $0x28] ss:$20 sps:$4 sm:$0xff]  }
 0x2ac   :  { %1997 = vmatpush3.bf16.msra.mxu0 %v2479_v48  ;;  %1562 = vmatprep.mubr.bf16.mxu0 %v2144_v5  ;;  %v2153_v48 = vld [vmem:[#allocation11 + $0x100] sm:$0xff]  }
 0x2ad   :  { %1998 = vmatprep.subr.bf16.mxu0 %v2146_v29 }
 0x2b0   :  { %1999 = vmatpush3.bf16.msra.mxu0 %v2146_v29 }
 0x2b1   :  { %2000 = vmatprep.subr.bf16.mxu0 %v2147_v7 }
 0x2b3   :  { %1563 = vmatmul.mubr.bf16.gmra.mxu0 %v2148_v14 }
 0x2b4   :  { %2001 = vmatpush3.bf16.msra.mxu0 %v2147_v7  ;;  %2012 = vmatprep.mubr.bf16.mxu0 %v2154_v8 }
 0x2b5   :  { %2002 = vmatprep.subr.bf16.mxu0 %v2149_v15 }
 0x2b8   :  { %2003 = vmatpush3.bf16.msra.mxu0 %v2149_v15 }
 0x2b9   :  { %2004 = vmatprep.subr.bf16.mxu0 %v2150_v16 }
 0x2bc   :  { %2005 = vmatpush3.bf16.msra.mxu0 %v2150_v16 }
 0x2bd   :  { %2006 = vmatprep.subr.bf16.mxu0 %v2151_v17 }
 0x2c0   :  { %2007 = vmatpush3.bf16.msra.mxu0 %v2151_v17 }
 0x2c1   :  { %2008 = vmatprep.subr.bf16.mxu0 %v2152_v19 }
 0x2c4   :  { %2009 = vmatpush3.bf16.msra.mxu0 %v2152_v19 }
 0x2c5   :  { %2010 = vmatprep.subr.bf16.mxu0 %v2153_v48 }
 0x2c8   :  { %2011 = vmatpush3.bf16.msra.mxu0 %v2153_v48 }
 0x2cb   :  { %2013 = vmatmul.mubr.bf16.vlgmr.msra.gmra.mxu0 %v2155_v20 }
 0x36b   :  { %v1926_v21 = vpop.f32.mrf.mxu0 }
 0x36d   :  { %v1927_v26 = vpop.f32.mrf.mxu0 }
 0x36e   :  { %v1928_v1 = vadd.f32 %v1927_v26, %v1926_v21 }
 0x36f   :  { %v1929_v28 = vpop.f32.mrf.mxu0 }
 0x370   :  { %v1557_v41 = vadd.f32 %v1928_v1, %v1777_v3 }
 0x371   :  { %v1930_v32 = vpop.f32.mrf.mxu0 }
 0x372   :  { %v1931_v42 = vadd.f32 %v1930_v32, %v1929_v28  ;;  %v1606_v13 = vadd.f32 %v1956_v44, %v1557_v41 }
 0x373   :  { %v1932_v27 = vpop.f32.mrf.mxu0 }
 0x374   :  { %v1560_v47 = vadd.f32 %v1931_v42, %v1777_v3 }
 0x375   :  { %v1933_v34 = vpop.f32.mrf.mxu0 }
 0x376   :  { %v1934_v37 = vadd.f32 %v1933_v34, %v1932_v27  ;;  %v1609_v55 = vadd.f32 %v1959_v50, %v1560_v47 }
 0x377   :  { %v1935_v10 = vpop.f32.mrf.mxu0 }
 0x378   :  { %v1565_v38 = vadd.f32 %v1934_v37, %v1777_v3 }
 0x379   :  { %v1936_v0 = vpop.f32.mrf.mxu0 }
 0x37a   :  { %v1937_v39 = vadd.f32 %v1936_v0, %v1935_v10  ;;  %v1614_v9 = vadd.f32 %v1962_v40, %v1565_v38 }
 0x37c   :  { %v1568_v45 = vadd.f32 %v1937_v39, %v1777_v3 }
 0x37e   :  { %v1617_v52 = vadd.f32 %v1965_v46, %v1568_v45 }
 0x38b   :  { %v2014_v12 = vpop.f32.mrf.mxu0 }
 0x38c   :  { %v1663_v49 = vadd.f32 %v2014_v12, %v1614_v9 }
 0x38d   :  { %v1654_v18 = vpop.f32.mrf.mxu0 }
 0x38e   :  { %1671 = vst [vmem:[#allocation14 + $0x10] sm:$0xff] %v1663_v49  ;;  %v1655_v51 = vadd.f32 %v1654_v18, %v1606_v13 }
 0x38f   :  { %v2015_v53 = vpop.f32.mrf.mxu0 }
 0x390   :  { %1669 = vst [vmem:[#allocation14] sm:$0xff] %v1655_v51  ;;  %v1666_v54 = vadd.f32 %v2015_v53, %v1617_v52 }
 0x391   :  { %v1657_v56 = vpop.f32.mrf.mxu0 }
 0x392   :  { %1672 = vst [vmem:[#allocation14 + $0x18] sm:$0xff] %v1666_v54  ;;  %v1658_v57 = vadd.f32 %v1657_v56, %v1609_v55 }
 0x394   :  { %1670 = vst [vmem:[#allocation14 + $0x8] sm:$0xff] %v1658_v57 }
 0x395   :  { %2299 = shalt.err (!%p2296_p6)
}
 0x396   :  { %1684 = dma.vmem_to_hbm [thread:$0]  %s1679_s1, 512, %s2506_s7, [#allocation5], %s2325_s17, %s2325_s17, %s2326_s18  }
 0x397   :  { %2316 = dma.done.wait [#allocation5], 512  }
 0x398   :  { %2317 = vsyncadd [#allocation5], 4294966784 }
 0x399   :  { %1688 = vsyncpa [#allocation4], 1 }
 0x39a   :  { %1689 = vsyncpa [#allocation7], 1 }
 0x39b   :  { %1690 = vsyncpa [#allocation10], 1 }
 0x39c   :  { %1691 = vsyncpa [#allocation13], 1 }
 0x39d   :  { %1692 = vsyncpa [#allocation5], 1 }

</bundles_post_ra>
